<compile_context>
chip_gen: v7x
topology: tpu7x:2x2x1
jax: 0.10.0
libtpu: 0.0.40
codegen_flags: <defaults>
</compile_context>

<pallas_src>
import jax
import jax.numpy as jnp
from jax.experimental import pallas as pl
from jax.experimental.pallas import tpu as pltpu

LANES = 128  # TPU lane width; the 1-unit head is padded to this many columns.


def _round_up(x, m):
    return ((x + m - 1) // m) * m


def qfunc_kernel(obs_ref, act_ref, w1o_ref, w1a_ref, w2_ref, w3_ref, b_ref, out_ref):
    h1_dim = w1o_ref.shape[1]
    h2_dim = w2_ref.shape[1]

    obs = obs_ref[...]          # (TILE_B, obs_dim)
    act = act_ref[...]          # (TILE_B, act_dim)

    # Layer 1: split-weight linear == concat([obs, act]) @ W1, then ReLU.
    h1 = jnp.dot(obs, w1o_ref[...], preferred_element_type=jnp.float32)
    h1 = h1 + jnp.dot(act, w1a_ref[...], preferred_element_type=jnp.float32)
    h1 = jnp.maximum(h1 + b_ref[0:1, :h1_dim], 0.0)

    # Layer 2: linear + ReLU.
    h2 = jnp.dot(h1, w2_ref[...], preferred_element_type=jnp.float32)
    h2 = jnp.maximum(h2 + b_ref[1:2, :h2_dim], 0.0)

    # Head: lane-padded to 128 output columns; the real q is column 0,
    # remaining columns are exactly zero (zero weights, zero bias).
    q_pad = jnp.dot(h2, w3_ref[...], preferred_element_type=jnp.float32)
    q_pad = q_pad + b_ref[2:3, :LANES]
    out_ref[...] = q_pad.astype(out_ref.dtype)


def mlp_q_forward(obs, act, kernel_params, *, tile_b=512):
    """Pallas equivalent of MLPQFunction.forward(obs, act) -> shape (B,)."""
    w1o, w1a, w2, w3p, b_stack = kernel_params
    B, obs_dim = obs.shape
    act_dim = act.shape[1]
    h1_dim = w1o.shape[1]
    h2_dim = w2.shape[1]

    # Batch tiling: tile must be a sublane multiple (8); pad B up to a whole
    # number of tiles (padded rows are sliced away after the kernel).
    tile_b = _round_up(tile_b, 8)
    tile_b_eff = min(tile_b, _round_up(B, 8))
    B_pad = _round_up(B, tile_b_eff)
    if B_pad != B:
        pad = B_pad - B
        obs = jnp.pad(obs, ((0, pad), (0, 0)))
        act = jnp.pad(act, ((0, pad), (0, 0)))

    grid = (B_pad // tile_b_eff,)

    flops = 2 * B_pad * (obs_dim * h1_dim + act_dim * h1_dim
                         + h1_dim * h2_dim + h2_dim * LANES)
    param_elems = (w1o.size + w1a.size + w2.size + w3p.size + b_stack.size)
    bytes_accessed = 4 * (B_pad * (obs_dim + act_dim)   # inputs
                          + B_pad * LANES               # padded output
                          + param_elems)                # resident weights

    out = pl.pallas_call(
        qfunc_kernel,
        out_shape=jax.ShapeDtypeStruct((B_pad, LANES), jnp.float32),
        grid=grid,
        in_specs=[
            # Batch-tiled activations.
            pl.BlockSpec((tile_b_eff, obs_dim), lambda i: (i, 0)),
            pl.BlockSpec((tile_b_eff, act_dim), lambda i: (i, 0)),
            # Weights / biases: constant index_map -> resident in VMEM,
            # DMA'd exactly once for the whole grid.
            pl.BlockSpec(w1o.shape, lambda i: (0, 0)),
            pl.BlockSpec(w1a.shape, lambda i: (0, 0)),
            pl.BlockSpec(w2.shape, lambda i: (0, 0)),
            pl.BlockSpec(w3p.shape, lambda i: (0, 0)),
            pl.BlockSpec(b_stack.shape, lambda i: (0, 0)),
        ],
        out_specs=pl.BlockSpec((tile_b_eff, LANES), lambda i: (i, 0)),
        compiler_params=pltpu.CompilerParams(
            dimension_semantics=("parallel",)),
        cost_estimate=pl.CostEstimate(
            flops=int(flops), transcendentals=0,
            bytes_accessed=int(bytes_accessed)),
    )(obs, act, w1o, w1a, w2, w3p, b_stack)

    # squeeze(-1) equivalent: q lives in column 0; drop padded rows.
    return out[:B, 0]


def init_params(key, obs_dim, act_dim, hidden_sizes):
    """Deterministic init mirroring nn.Linear default (uniform +-1/sqrt(fan_in)).

    Returns 'natural' params: [(W (in,out), b (out,)), ...] for
    in->H1->H2->1, exactly matching the PyTorch MLP structure.
    """
    sizes = [obs_dim + act_dim] + list(hidden_sizes) + [1]
    params = []
    for j in range(len(sizes) - 1):
        key, kw, kb = jax.random.split(key, 3)
        fan_in = sizes[j]
        bound = 1.0 / float(fan_in) ** 0.5
        w = jax.random.uniform(kw, (sizes[j], sizes[j + 1]), jnp.float32, -bound, bound)
        b = jax.random.uniform(kb, (sizes[j + 1],), jnp.float32, -bound, bound)
        params.append((w, b))
    return params


def prepare_kernel_params(params, obs_dim, act_dim):
    """Repack natural params for the kernel: split W1, lane-pad the head,
    stack all biases into one operand."""
    (w1, b1), (w2, b2), (w3, b3) = params
    h1_dim = w1.shape[1]
    h2_dim = w2.shape[1]
    assert w3.shape[1] == 1, "MLPQFunction head must have 1 output unit"

    # Split layer-1 weight so the kernel never needs concat([obs, act]).
    w1_obs = w1[:obs_dim, :]
    w1_act = w1[obs_dim:obs_dim + act_dim, :]

    # Lane-dense head: (h2, 1) -> (h2, 128), real weights in column 0.
    w3_pad = jnp.zeros((h2_dim, LANES), jnp.float32).at[:, 0].set(w3[:, 0])

    # Pack biases into one (3, width) array (width is a lane multiple):
    #   row 0: b1 (padded), row 1: b2 (padded), row 2: lane-padded b3.
    width = _round_up(max(LANES, h1_dim, h2_dim), LANES)
    b_stack = jnp.zeros((3, width), jnp.float32)
    b_stack = b_stack.at[0, :h1_dim].set(b1)
    b_stack = b_stack.at[1, :h2_dim].set(b2)
    b_stack = b_stack.at[2, 0].set(b3[0])

    return (w1_obs, w1_act, w2, w3_pad, b_stack)


def mlp_q_forward_ref(obs, act, params):
    """Pure-JAX reference (natural params) for correctness checking."""
    x = jnp.concatenate([obs, act], axis=-1)
    (w1, b1), (w2, b2), (w3, b3) = params
    h1 = jnp.maximum(x @ w1 + b1, 0.0)
    h2 = jnp.maximum(h1 @ w2 + b2, 0.0)
    q = h2 @ w3 + b3
    return jnp.squeeze(q, -1)


if __name__ == "__main__":
    obs_dim, act_dim = 8, 4
    hidden_sizes = (32, 32)  # activation = ReLU
    batch = 2

    key = jax.random.PRNGKey(0)
    k_obs, k_act, k_params = jax.random.split(key, 3)
    obs = jax.random.normal(k_obs, (batch, obs_dim), jnp.float32)
    act = jax.random.normal(k_act, (batch, act_dim), jnp.float32)

    params = init_params(k_params, obs_dim, act_dim, hidden_sizes)
    kernel_params = prepare_kernel_params(params, obs_dim, act_dim)

    q = mlp_q_forward(obs, act, kernel_params)
    q = jax.block_until_ready(q)

    q_ref = mlp_q_forward_ref(obs, act, params)
    assert q.shape == (batch,)
    assert jnp.allclose(q, q_ref, atol=1e-5, rtol=1e-5)

    print("KERNEL_OK")
</pallas_src>

<mosaic_0001>
module attributes {stable_mosaic.version = 11 : i64} {
  func.func @qfunc_kernel(%arg0: i32, %arg1: memref<8x8xf32, #tpu.memory_space<vmem>>, %arg2: memref<8x4xf32, #tpu.memory_space<vmem>>, %arg3: memref<8x32xf32, #tpu.memory_space<vmem>>, %arg4: memref<4x32xf32, #tpu.memory_space<vmem>>, %arg5: memref<32x32xf32, #tpu.memory_space<vmem>>, %arg6: memref<32x128xf32, #tpu.memory_space<vmem>>, %arg7: memref<3x128xf32, #tpu.memory_space<vmem>>, %arg8: memref<8x128xf32, #tpu.memory_space<vmem>>) attributes {dimension_semantics = [#tpu.dimension_semantics<parallel>], iteration_bounds = array<i64: 1>, scalar_prefetch = 0 : i64, scratch_operands = 0 : i64, tpu.core_type = #tpu.core_type<tc>, window_params = [{transform_indices = @transform_0, window_bounds = array<i64: 8, 8>}, {transform_indices = @transform_1, window_bounds = array<i64: 8, 4>}, {pipeline_mode = #tpu.pipeline_mode<synchronous>, transform_indices = @transform_2, window_bounds = array<i64: 8, 32>}, {pipeline_mode = #tpu.pipeline_mode<synchronous>, transform_indices = @transform_3, window_bounds = array<i64: 4, 32>}, {pipeline_mode = #tpu.pipeline_mode<synchronous>, transform_indices = @transform_4, window_bounds = array<i64: 32, 32>}, {pipeline_mode = #tpu.pipeline_mode<synchronous>, transform_indices = @transform_5, window_bounds = array<i64: 32, 128>}, {pipeline_mode = #tpu.pipeline_mode<synchronous>, transform_indices = @transform_6, window_bounds = array<i64: 3, 128>}, {transform_indices = @transform_7, window_bounds = array<i64: 8, 128>}]} {
    %c0 = arith.constant 0 : index
    %c0_0 = arith.constant 0 : index
    %0 = vector.load %arg1[%c0, %c0_0] : memref<8x8xf32, #tpu.memory_space<vmem>>, vector<8x8xf32>
    %c0_1 = arith.constant 0 : index
    %c0_2 = arith.constant 0 : index
    %1 = vector.load %arg2[%c0_1, %c0_2] : memref<8x4xf32, #tpu.memory_space<vmem>>, vector<8x4xf32>
    %c0_3 = arith.constant 0 : index
    %c0_4 = arith.constant 0 : index
    %2 = vector.load %arg3[%c0_3, %c0_4] : memref<8x32xf32, #tpu.memory_space<vmem>>, vector<8x32xf32>
    %cst = arith.constant dense<0.000000e+00> : vector<8x32xf32>
    %3 = tpu.matmul %0, %2, %cst {dimension_numbers = #tpu.dot_dimension_numbers<[1], [0], [0], [1], [0, 0, 1, 1], [], []>} : vector<8x8xf32>, vector<8x32xf32>, vector<8x32xf32> -> vector<8x32xf32>
    %c0_5 = arith.constant 0 : index
    %c0_6 = arith.constant 0 : index
    %4 = vector.load %arg4[%c0_5, %c0_6] : memref<4x32xf32, #tpu.memory_space<vmem>>, vector<4x32xf32>
    %cst_7 = arith.constant dense<0.000000e+00> : vector<8x32xf32>
    %5 = tpu.matmul %1, %4, %cst_7 {dimension_numbers = #tpu.dot_dimension_numbers<[1], [0], [0], [1], [0, 0, 1, 1], [], []>} : vector<8x4xf32>, vector<4x32xf32>, vector<8x32xf32> -> vector<8x32xf32>
    %6 = arith.addf %3, %5 : vector<8x32xf32>
    %c0_8 = arith.constant 0 : index
    %c0_9 = arith.constant 0 : index
    %7 = vector.load %arg7[%c0_8, %c0_9] : memref<3x128xf32, #tpu.memory_space<vmem>>, vector<1x32xf32>
    %8 = vector.broadcast %7 : vector<1x32xf32> to vector<8x32xf32>
    %9 = arith.addf %6, %8 : vector<8x32xf32>
    %cst_10 = arith.constant 0.000000e+00 : f32
    %10 = vector.broadcast %cst_10 : f32 to vector<8x32xf32>
    %11 = arith.maximumf %9, %10 : vector<8x32xf32>
    %c0_11 = arith.constant 0 : index
    %c0_12 = arith.constant 0 : index
    %12 = vector.load %arg5[%c0_11, %c0_12] : memref<32x32xf32, #tpu.memory_space<vmem>>, vector<32x32xf32>
    %cst_13 = arith.constant dense<0.000000e+00> : vector<8x32xf32>
    %13 = tpu.matmul %11, %12, %cst_13 {dimension_numbers = #tpu.dot_dimension_numbers<[1], [0], [0], [1], [0, 0, 1, 1], [], []>} : vector<8x32xf32>, vector<32x32xf32>, vector<8x32xf32> -> vector<8x32xf32>
    %c1 = arith.constant 1 : index
    %c0_14 = arith.constant 0 : index
    %14 = vector.load %arg7[%c1, %c0_14] : memref<3x128xf32, #tpu.memory_space<vmem>>, vector<1x32xf32>
    %15 = vector.broadcast %14 : vector<1x32xf32> to vector<8x32xf32>
    %16 = arith.addf %13, %15 : vector<8x32xf32>
    %cst_15 = arith.constant 0.000000e+00 : f32
    %17 = vector.broadcast %cst_15 : f32 to vector<8x32xf32>
    %18 = arith.maximumf %16, %17 : vector<8x32xf32>
    %c0_16 = arith.constant 0 : index
    %c0_17 = arith.constant 0 : index
    %19 = vector.load %arg6[%c0_16, %c0_17] : memref<32x128xf32, #tpu.memory_space<vmem>>, vector<32x128xf32>
    %cst_18 = arith.constant dense<0.000000e+00> : vector<8x128xf32>
    %20 = tpu.matmul %18, %19, %cst_18 {dimension_numbers = #tpu.dot_dimension_numbers<[1], [0], [0], [1], [0, 0, 1, 1], [], []>} : vector<8x32xf32>, vector<32x128xf32>, vector<8x128xf32> -> vector<8x128xf32>
    %c2 = arith.constant 2 : index
    %c0_19 = arith.constant 0 : index
    %21 = vector.load %arg7[%c2, %c0_19] : memref<3x128xf32, #tpu.memory_space<vmem>>, vector<1x128xf32>
    %22 = vector.broadcast %21 : vector<1x128xf32> to vector<8x128xf32>
    %23 = arith.addf %20, %22 : vector<8x128xf32>
    %c0_20 = arith.constant 0 : index
    %c0_21 = arith.constant 0 : index
    %24 = vector.load %arg8[%c0_20, %c0_21] : memref<8x128xf32, #tpu.memory_space<vmem>>, vector<8x128xf32>
    tpu.vector_store %arg8[%c0_20, %c0_21], %23 {strides = array<i32>} : memref<8x128xf32, #tpu.memory_space<vmem>>, vector<8x128xf32>,
    return
  }
  func.func @transform_0(%arg0: i32) -> (i32, i32) {
    %c0_i32 = arith.constant 0 : i32
    %c0_i32_0 = arith.constant 0 : i32
    return %arg0, %c0_i32 : i32, i32
  }
  func.func @transform_1(%arg0: i32) -> (i32, i32) {
    %c0_i32 = arith.constant 0 : i32
    %c0_i32_0 = arith.constant 0 : i32
    return %arg0, %c0_i32 : i32, i32
  }
  func.func @transform_2(%arg0: i32) -> (i32, i32) {
    %c0_i32 = arith.constant 0 : i32
    %c0_i32_0 = arith.constant 0 : i32
    %c0_i32_1 = arith.constant 0 : i32
    return %c0_i32, %c0_i32_0 : i32, i32
  }
  func.func @transform_3(%arg0: i32) -> (i32, i32) {
    %c0_i32 = arith.constant 0 : i32
    %c0_i32_0 = arith.constant 0 : i32
    %c0_i32_1 = arith.constant 0 : i32
    return %c0_i32, %c0_i32_0 : i32, i32
  }
  func.func @transform_4(%arg0: i32) -> (i32, i32) {
    %c0_i32 = arith.constant 0 : i32
    %c0_i32_0 = arith.constant 0 : i32
    %c0_i32_1 = arith.constant 0 : i32
    return %c0_i32, %c0_i32_0 : i32, i32
  }
  func.func @transform_5(%arg0: i32) -> (i32, i32) {
    %c0_i32 = arith.constant 0 : i32
    %c0_i32_0 = arith.constant 0 : i32
    %c0_i32_1 = arith.constant 0 : i32
    return %c0_i32, %c0_i32_0 : i32, i32
  }
  func.func @transform_6(%arg0: i32) -> (i32, i32) {
    %c0_i32 = arith.constant 0 : i32
    %c0_i32_0 = arith.constant 0 : i32
    %c0_i32_1 = arith.constant 0 : i32
    return %c0_i32, %c0_i32_0 : i32, i32
  }
  func.func @transform_7(%arg0: i32) -> (i32, i32) {
    %c0_i32 = arith.constant 0 : i32
    %c0_i32_0 = arith.constant 0 : i32
    return %arg0, %c0_i32 : i32, i32
  }
}

</mosaic_0001>

<bundles_post_ra>
// kernel: tpu_custom_call.1
= control target key start
LH: loop header
LB: loop body
LE: loop exit
PB: predicated region body
PF: predicated region fallthrough
CT: control target
= control target key end

     0   :  { %12 = vsyncpa [#allocation3], 0  ;;  %s656_s0 = inlined_call_operand.vmem [shape: f32[8,8], index: 0, kind: input, shape index: {}]   ;;  %s657_s1 = inlined_call_operand.vmem [shape: f32[8,4], index: 1, kind: input, shape index: {}]   ;;  %s658_s2 = inlined_call_operand.vmem [shape: f32[8,32], index: 2, kind: input, shape index: {}]   ;;  %s659_s3 = inlined_call_operand.vmem [shape: f32[4,32], index: 3, kind: input, shape index: {}]   ;;  %s660_s4 = inlined_call_operand.hbm [shape: f32[32,32], index: 4, kind: input, shape index: {}]   ;;  %s661_s5 = inlined_call_operand.hbm [shape: f32[32,128], index: 5, kind: input, shape index: {}]   ;;  %s662_s6 = inlined_call_operand.vmem [shape: f32[3,128], index: 6, kind: input, shape index: {}]   ;;  %s663_s7 = inlined_call_operand.hbm [shape: f32[8,128], index: 7, kind: output, shape index: {}]  }
   0x1   :  { %13 = vsyncpa [#allocation6], 0 }
   0x2   :  { %14 = vsyncpa [#allocation4], 0  ;;  %s547_s24 = smov [#allocation2]   ;;  %s475_s28 = scalar_lea.hbm %s660_s4, 512 }
   0x3   :  { %s28_s25 = sshll.u32 %s547_s24, 4  ;;  %p476_p0 = scmp.ne.s32.totalorder %s660_s4, %s475_s28  ;;  %s29_s25 = int_to_ptr.vmem [resolvable:$true] %s28_s25 }
   0x4   :  { %p479_p1 = scmp.lt.u32.totalorder %s475_s28, %s660_s4 }
   0x6   :  { %p481_p2 = pnand %p479_p1, %p476_p0 }
   0x8   :  { %484 = shalt.err (!%p481_p2)
}
   0x9   :  { %s485_s10 = scalar_lea.vmem %s29_s25, 512  ;;  %p490_p4 = scmp.lt.s32.totalorder %s29_s25, %s29_s25 }
   0xa   :  { %p486_p3 = scmp.ne.s32.totalorder %s29_s25, %s485_s10  ;;  %p491_p5 = scmp.lt.s32.totalorder %s485_s10, %s485_s10 }
   0xc   :  { %p492_p6 = por %p491_p5, %p490_p4 }
   0xe   :  { %p493_p7 = pnand %p492_p6, %p486_p3 }
  0x10   :  { %496 = shalt.err (!%p493_p7)
}
  0x11   :  { %s548_s11 = smov 128   ;;  %s549_s12 = smov 8  }
  0x12   :  { %34 = dma.hbm_to_vmem [thread:$0]  %s660_s4, 512, %s29_s25, [#allocation3], %s548_s11, %s548_s11, %s549_s12  }
  0x13   :  { %s550_s15 = smov [#allocation5]   ;;  %s497_s19 = scalar_lea.hbm %s661_s5, 512 }
  0x14   :  { %s40_s16 = sshll.u32 %s550_s15, 4  ;;  %p498_p8 = scmp.ne.s32.totalorder %s661_s5, %s497_s19  ;;  %s41_s16 = int_to_ptr.vmem [resolvable:$true] %s40_s16 }
  0x15   :  { %p501_p9 = scmp.lt.u32.totalorder %s497_s19, %s661_s5 }
  0x17   :  { %p503_p10 = pnand %p501_p9, %p498_p8 }
  0x19   :  { %506 = shalt.err (!%p503_p10)
}
  0x1a   :  { %s507_s24 = scalar_lea.vmem %s41_s16, 512  ;;  %p512_p12 = scmp.lt.s32.totalorder %s41_s16, %s41_s16 }
  0x1b   :  { %p508_p11 = scmp.ne.s32.totalorder %s41_s16, %s507_s24  ;;  %p513_p13 = scmp.lt.s32.totalorder %s507_s24, %s507_s24 }
  0x1d   :  { %p514_p0 = por %p513_p13, %p512_p12 }
  0x1f   :  { %p515_p1 = pnand %p514_p0, %p508_p11 }
  0x21   :  { %518 = shalt.err (!%p515_p1)
}
  0x22   :  { %46 = dma.hbm_to_vmem [thread:$0]  %s661_s5, 512, %s41_s16, [#allocation6], %s548_s11, %s548_s11, %s549_s12  }
  0x23   :  { %541 = dma.done.wait [#allocation3], 512  }
  0x24   :  { %542 = vsyncadd [#allocation3], 4294966784 }
  0x25   :  { %543 = dma.done.wait [#allocation6], 512  }
  0x26   :  { %544 = vsyncadd [#allocation6], 4294966784  ;;  %v551_v0 = vmov 0.0   ;;  %vm552_vm0 = vmmov 0   ;;  %vm63_vm1 = vcmask 1043456   ;;  %vm59_vm2 = vcmask 31744  }
  0x27   :  { %423 = vmatprep.subr.mxu0 %v551_v0  ;;  %428 = vmatprep.subr.mxu1 %v551_v0  ;;  %vm137_vm3 = vcmask 64512   ;;  %v58_v1 = vld [vmem:[%s659_s3] sm:$0xf]  ;;  %v553_v5 = vmov 0.0|0.0   ;;  %v219_v7 = vld [vmem:[#allocation2 + $0x8] sm:$0xff]  ;;  %v220_v9 = vld [vmem:[#allocation2 + $0x10] sm:$0xff] }
  0x28   :  { %425 = vmatprep.mubr.msk.f32.mxu0 %vm552_vm0, %v551_v0  ;;  %430 = vmatprep.mubr.msk.f32.mxu1 %vm552_vm0, %v551_v0  ;;  %v57_v2 = vld [vmem:[%s658_s2] sm:$0xff]  ;;  %v221_v10 = vld [vmem:[#allocation2 + $0x18] sm:$0xff]  ;;  %v303_v13 = vld [vmem:[#allocation5 + $0x8] sm:$0xff]  ;;  %vm227_vm4 = vcmask 261120   ;;  %s554_s12 = smov [#allocation7]  }
  0x29   :  { %v56_v3 = vld [vmem:[%s657_s1] sm:$0xff]  ;;  %424 = vmatpush3.msk.msra.mxu0 %vm63_vm1, %v58_v1  ;;  %429 = vmatpush3.msra.mxu1 %v57_v2  ;;  %v459_v11 = vpack.c.bf16 %v221_v10, %v220_v9  ;;  %v304_v23 = vld [vmem:[#allocation5 + $0x10] sm:$0xff]  ;;  %v305_v24 = vld [vmem:[#allocation5 + $0x18] sm:$0xff]  ;;  %s391_s13 = sshll.u32 %s554_s12, 4  ;;  %s392_s13 = int_to_ptr.vmem [resolvable:$true] %s391_s13 }
  0x2a   :  { %v55_v4 = vld [vmem:[%s656_s0] sm:$0xff]  ;;  %426 = vmatmul.mubr.msk.f32.vlgmr.msra.gmra.mrb[0].mxu0 %vm59_vm2, %v56_v3  ;;  %455 = vmatprep.subr.bf16.mxu0 %v553_v5  ;;  %v465_v25 = vpack.c.bf16 %v305_v24, %v304_v23  ;;  %s519_s14 = scalar_lea.vmem %s392_s13, 128  ;;  %p524_p3 = scmp.lt.s32.totalorder %s392_s13, %s392_s13 }
  0x2b   :  { %431 = vmatmul.mubr.msk.f32.vlgmr.msra.gmra.mrb[0].mxu1 %vm137_vm3, %v55_v4  ;;  %441 = vmatprep.mubr.msk.f32.mxu0 %vm552_vm0, %v551_v0  ;;  %v218_v6 = vld [vmem:[#allocation2] sm:$0xff]  ;;  %p520_p2 = scmp.ne.s32.totalorder %s392_s13, %s519_s14  ;;  %p525_p4 = scmp.lt.s32.totalorder %s519_s14, %s519_s14 }
  0x2c   :  { %461 = vmatprep.subr.bf16.mxu1 %v553_v5  ;;  %452 = vmatprep.mubr.msk.f32.mxu1 %vm552_vm0, %v551_v0  ;;  %v456_v8 = vpack.c.bf16 %v219_v7, %v218_v6  ;;  %v302_v12 = vld [vmem:[#allocation5] sm:$0xff] }
  0x2d   :  { %v462_v14 = vpack.c.bf16 %v303_v13, %v302_v12  ;;  %v404_v17 = vld [vmem:[%s662_s6] ss:$0 sm:$0xff]  ;;  %v405_v26 = vld [vmem:[%s662_s6 + $0x1] ss:$0 sm:$0xff]  ;;  %v407_v31 = vld [vmem:[%s662_s6 + $0x2] ss:$0 sm:$0xff]  ;;  %p526_p5 = por %p525_p4, %p524_p3 }
  0x2e   :  { %457 = vmatpush3.bf16.msra.mxu0 %v456_v8 }
  0x2f   :  { %458 = vmatprep.subr.bf16.mxu0 %v553_v5  ;;  %463 = vmatpush3.bf16.msra.mxu1 %v462_v14  ;;  %p527_p6 = pnand %p526_p5, %p520_p2 }
  0x30   :  { %464 = vmatprep.subr.bf16.mxu1 %v553_v5 }
  0x32   :  { %460 = vmatpush3.bf16.msra.mxu0 %v459_v11 }
  0x33   :  { %466 = vmatpush3.bf16.msra.mxu1 %v465_v25 }
  0xfd   :  { %v133_v15 = vpop.f32.mrb[0].mxu0 }
  0xfe   :  { %v207_v16 = vpop.f32.mrb[0].mxu1  ;;  %v427_v19 = vpop.f32.mrb[1].mxu0 }
  0xff   :  { %v208_v18 = vadd.f32 %v207_v16, %v133_v15  ;;  %v432_v20 = vpop.f32.mrb[1].mxu1 }
 0x101   :  { %v216_v21 = vadd.f32 %v404_v17, %v208_v18 }
 0x103   :  { %v217_v22 = vmax.f32 %v216_v21, 0.0 }
 0x105   :  { %442 = vmatmul.mubr.msk.f32.vlgmr.msra.gmra.mrb[2].mxu0 %vm227_vm4, %v217_v22 }
 0x1d8   :  { %v297_v27 = vpop.f32.mrb[2].mxu0 }
 0x1d9   :  { %v298_v28 = vadd.f32 %v405_v26, %v297_v27  ;;  %v443_v29 = vpop.f32.mrb[3].mxu0 }
 0x1db   :  { %v301_v30 = vmax.f32 %v298_v28, 0.0 }
 0x1dd   :  { %453 = vmatmul.mubr.msk.f32.vlgmr.msra.gmra.mrb[2].mxu1 %vm227_vm4, %v301_v30 }
 0x2b0   :  { %v380_v32 = vpop.f32.mrb[2].mxu1 }
 0x2b1   :  { %v381_v33 = vadd.f32 %v407_v31, %v380_v32  ;;  %v454_v34 = vpop.f32.mrb[3].mxu1 }
 0x2b3   :  { %384 = vst [vmem:[#allocation7] sm:$0xff] %v381_v33 }
 0x2b4   :  { %530 = shalt.err (!%p527_p6)
}
 0x2b5   :  { %s531_s17 = scalar_lea.hbm %s663_s7, 128 }
 0x2b6   :  { %p532_p7 = scmp.ne.s32.totalorder %s663_s7, %s531_s17  ;;  %p535_p8 = scmp.lt.u32.totalorder %s531_s17, %s663_s7 }
 0x2b8   :  { %p537_p9 = pnand %p535_p8, %p532_p7 }
 0x2ba   :  { %540 = shalt.err (!%p537_p9)
}
 0x2bb   :  { %394 = dma.vmem_to_hbm [thread:$0]  %s392_s13, 128, %s663_s7, [#allocation4]  }
 0x2bc   :  { %545 = dma.done.wait [#allocation4], 128  }
 0x2bd   :  { %546 = vsyncadd [#allocation4], 4294967168 }
 0x2be   :  { %398 = vsyncpa [#allocation3], 1 }
 0x2bf   :  { %399 = vsyncpa [#allocation6], 1 }
 0x2c0   :  { %400 = vsyncpa [#allocation4], 1 }

</bundles_post_ra>
